<compile_context>
chip_gen: v6e
topology: v6e:2x2x1
jax: 0.10.0
libtpu: 0.0.40
codegen_flags: <defaults>
</compile_context>

<pallas_src>
import math

import jax
import jax.numpy as jnp
from jax import lax
from jax.experimental import pallas as pl
from jax.experimental.pallas import tpu as pltpu


# --------------------------------------------------------------------------
# Prologue: K/V projection (computed once per x_B token, not per query tile).
# --------------------------------------------------------------------------
def _kv_proj_kernel(xb_ref, wk_ref, wv_ref, k_ref, v_ref):
    xb = xb_ref[0]                                                # (t, D) bf16
    k_ref[0] = jnp.dot(xb, wk_ref[...],
                       preferred_element_type=jnp.float32).astype(k_ref.dtype)
    v_ref[0] = jnp.dot(xb, wv_ref[...],
                       preferred_element_type=jnp.float32).astype(v_ref.dtype)


# --------------------------------------------------------------------------
# Main: flash-style cross-attention + fused residual add.
# Grid: (batch, query-tile, kv-tile); kv-tile is the reduction axis.
# --------------------------------------------------------------------------
def _flash_residual_kernel(xa_ref, k_ref, v_ref, wq_ref, wo_ref, out_ref,
                           q_sc, m_sc, l_sc, acc_sc):
    ki = pl.program_id(2)
    nk = pl.num_programs(2)

    d = xa_ref.shape[-1]
    scale = 1.0 / math.sqrt(d)

    # ---- init (once per (b, qi) tile): Q projection + online-softmax state ----
    @pl.when(ki == 0)
    def _():
        q = jnp.dot(xa_ref[0], wq_ref[...],
                    preferred_element_type=jnp.float32)           # (tq, D) f32
        q_sc[...] = (q * scale).astype(q_sc.dtype)                # back to bf16
        m_sc[...] = jnp.full(m_sc.shape, -jnp.inf, dtype=m_sc.dtype)
        l_sc[...] = jnp.zeros(l_sc.shape, dtype=l_sc.dtype)
        acc_sc[...] = jnp.zeros(acc_sc.shape, dtype=acc_sc.dtype)

    # ---- per kv-tile: online softmax update (K/V already projected) ----
    k = k_ref[0]                                                  # (tkv, D) bf16
    v = v_ref[0]                                                  # (tkv, D) bf16

    # scores: contract last dims directly -> no materialized k transpose.
    s = lax.dot_general(q_sc[...], k, (((1,), (1,)), ((), ())),
                        preferred_element_type=jnp.float32)       # (tq, tkv) f32

    m_prev = m_sc[...]
    m_new = jnp.maximum(m_prev, jnp.max(s, axis=-1, keepdims=True))
    alpha = jnp.exp(m_prev - m_new)                               # f32 (v5e: no bf16 EUP)
    p = jnp.exp(s - m_new)                                        # (tq, tkv) f32
    l_sc[...] = alpha * l_sc[...] + jnp.sum(p, axis=-1, keepdims=True)
    acc_sc[...] = alpha * acc_sc[...] + jnp.dot(
        p.astype(v.dtype), v, preferred_element_type=jnp.float32)  # bf16 MXU path
    m_sc[...] = m_new

    # ---- finalize: normalize, output projection, residual add in f32 ----
    @pl.when(ki == nk - 1)
    def _():
        attn = acc_sc[...] * pl.reciprocal(l_sc[...], approx=True)  # (tq, D) f32
        o = jnp.dot(attn.astype(wo_ref.dtype), wo_ref[...],
                    preferred_element_type=jnp.float32)             # (tq, D) f32
        out_ref[0] = (o + xa_ref[0].astype(jnp.float32)).astype(out_ref.dtype)


def residual_cross_attention(x_a, x_b, wq, wk, wv, wo, *,
                             tq=256, tkv=512, tproj=512):
    """out = CrossAttention(x_a, x_b) + x_a  (flash kernel + fused residual)."""
    B, N_A, D = x_a.shape
    _, N_B, _ = x_b.shape

    # Lane-dense channel dim and clean tiling (bf16 needs (16,128) tiles).
    assert D % 128 == 0, "pad channels to a multiple of 128 (lane width)"
    tq = min(tq, N_A)
    tkv = min(tkv, N_B)
    tproj = min(tproj, N_B)
    assert N_A % tq == 0 and N_B % tkv == 0 and N_B % tproj == 0, (
        "sequence lengths must tile evenly")
    # TODO(synk): no kv-length masking; padded/ragged x_B would attend to garbage.

    vmem_limit = 48 * 1024 * 1024   # headroom on v7x's 64 MiB physical VMEM

    # ---- prologue: project K/V exactly once per x_B token ----
    kv_out = pl.pallas_call(
        _kv_proj_kernel,
        out_shape=(jax.ShapeDtypeStruct((B, N_B, D), x_b.dtype),
                   jax.ShapeDtypeStruct((B, N_B, D), x_b.dtype)),
        grid_spec=pltpu.PrefetchScalarGridSpec(
            num_scalar_prefetch=0,
            grid=(B, N_B // tproj),
            in_specs=[
                pl.BlockSpec((1, tproj, D), lambda b, i: (b, i, 0)),
                pl.BlockSpec((D, D), lambda b, i: (0, 0)),   # wk resident
                pl.BlockSpec((D, D), lambda b, i: (0, 0)),   # wv resident
            ],
            out_specs=[
                pl.BlockSpec((1, tproj, D), lambda b, i: (b, i, 0)),
                pl.BlockSpec((1, tproj, D), lambda b, i: (b, i, 0)),
            ],
        ),
        compiler_params=pltpu.CompilerParams(
            dimension_semantics=("parallel", "parallel"),
            vmem_limit_bytes=vmem_limit,
        ),
    )(x_b, wk, wv)
    k_proj, v_proj = kv_out

    # ---- main flash cross-attention + residual ----
    grid = (B, N_A // tq, N_B // tkv)

    xa_spec = pl.BlockSpec((1, tq, D), lambda b, qi, ki: (b, qi, 0))
    k_spec = pl.BlockSpec((1, tkv, D), lambda b, qi, ki: (b, ki, 0))
    v_spec = pl.BlockSpec((1, tkv, D), lambda b, qi, ki: (b, ki, 0))
    wq_spec = pl.BlockSpec((D, D), lambda b, qi, ki: (0, 0))       # resident
    wo_spec = pl.BlockSpec((D, D), lambda b, qi, ki: (0, 0))       # resident
    out_spec = pl.BlockSpec((1, tq, D), lambda b, qi, ki: (b, qi, 0))

    return pl.pallas_call(
        _flash_residual_kernel,
        out_shape=jax.ShapeDtypeStruct((B, N_A, D), x_a.dtype),
        grid_spec=pltpu.PrefetchScalarGridSpec(
            num_scalar_prefetch=0,
            grid=grid,
            in_specs=[xa_spec, k_spec, v_spec, wq_spec, wo_spec],
            out_specs=out_spec,
            scratch_shapes=[
                pltpu.VMEM((tq, D), x_a.dtype),     # scaled Q (input dtype)
                pltpu.VMEM((tq, 1), jnp.float32),   # running max
                pltpu.VMEM((tq, 1), jnp.float32),   # running denom
                pltpu.VMEM((tq, D), jnp.float32),   # output accumulator
            ],
        ),
        compiler_params=pltpu.CompilerParams(
            dimension_semantics=("parallel", "parallel", "arbitrary"),
            vmem_limit_bytes=vmem_limit,
        ),
    )(x_a, k_proj, v_proj, wq, wo)


def _reference(x_a, x_b, wq, wk, wv, wo):
    """Pure-JAX f32 reference for correctness checking."""
    x_a = x_a.astype(jnp.float32)
    x_b = x_b.astype(jnp.float32)
    wq, wk, wv, wo = (w.astype(jnp.float32) for w in (wq, wk, wv, wo))
    d = x_a.shape[-1]
    q = jnp.einsum("bnd,de->bne", x_a, wq)
    k = jnp.einsum("bnd,de->bne", x_b, wk)
    v = jnp.einsum("bnd,de->bne", x_b, wv)
    s = jnp.einsum("bqd,bkd->bqk", q, k) / math.sqrt(d)
    p = jax.nn.softmax(s, axis=-1)
    o = jnp.einsum("bqk,bkd->bqd", p, v)
    o = jnp.einsum("bnd,de->bne", o, wo)
    return o + x_a


if __name__ == "__main__":
    key = jax.random.PRNGKey(0)
    k1, k2, k3, k4, k5, k6 = jax.random.split(key, 6)

    # Lane-dense channels (D=128); multiple query/kv tiles so the pipeline and
    # the online-softmax reduction are actually exercised at the default tiles.
    B, N_A, N_B, D = 2, 512, 1024, 128
    dtype = jnp.bfloat16

    x_a = jax.random.normal(k1, (B, N_A, D), dtype=jnp.float32).astype(dtype)
    x_b = jax.random.normal(k2, (B, N_B, D), dtype=jnp.float32).astype(dtype)

    # Deterministic synthetic weights (no checkpoint load), bf16 MXU-native.
    wq = (jax.random.normal(k3, (D, D), dtype=jnp.float32) * 0.05).astype(dtype)
    wk = (jax.random.normal(k4, (D, D), dtype=jnp.float32) * 0.05).astype(dtype)
    wv = (jax.random.normal(k5, (D, D), dtype=jnp.float32) * 0.05).astype(dtype)
    wo = (jax.random.normal(k6, (D, D), dtype=jnp.float32) * 0.05).astype(dtype)

    out = residual_cross_attention(x_a, x_b, wq, wk, wv, wo)
    out = jax.block_until_ready(out)

    ref = _reference(x_a, x_b, wq, wk, wv, wo)
    assert out.shape == (B, N_A, D)
    assert out.dtype == dtype
    max_err = float(jnp.max(jnp.abs(out.astype(jnp.float32) - ref)))
    assert jnp.allclose(out.astype(jnp.float32), ref, atol=1e-1, rtol=1e-1), (
        f"mismatch vs reference, max abs err = {max_err}")

    print("KERNEL_OK")
</pallas_src>

<mosaic_0001>
module attributes {stable_mosaic.version = 11 : i64} {
  func.func @_kv_proj_kernel(%arg0: i32, %arg1: i32, %arg2: memref<1x512x128xbf16, #tpu.memory_space<vmem>>, %arg3: memref<128x128xbf16, #tpu.memory_space<vmem>>, %arg4: memref<128x128xbf16, #tpu.memory_space<vmem>>, %arg5: memref<1x512x128xbf16, #tpu.memory_space<vmem>>, %arg6: memref<1x512x128xbf16, #tpu.memory_space<vmem>>) attributes {dimension_semantics = [#tpu.dimension_semantics<parallel>, #tpu.dimension_semantics<parallel>], iteration_bounds = array<i64: 2, 2>, scalar_prefetch = 0 : i64, scratch_operands = 0 : i64, tpu.core_type = #tpu.core_type<tc>, window_params = [{transform_indices = @transform_0, window_bounds = array<i64: 1, 512, 128>}, {pipeline_mode = #tpu.pipeline_mode<synchronous>, transform_indices = @transform_1, window_bounds = array<i64: 128, 128>}, {pipeline_mode = #tpu.pipeline_mode<synchronous>, transform_indices = @transform_2, window_bounds = array<i64: 128, 128>}, {transform_indices = @transform_3, window_bounds = array<i64: 1, 512, 128>}, {transform_indices = @transform_4, window_bounds = array<i64: 1, 512, 128>}]} {
    %c0 = arith.constant 0 : index
    %c0_0 = arith.constant 0 : index
    %c0_1 = arith.constant 0 : index
    %0 = vector.load %arg2[%c0, %c0_0, %c0_1] : memref<1x512x128xbf16, #tpu.memory_space<vmem>>, vector<1x512x128xbf16>
    %1 = vector.shape_cast %0 : vector<1x512x128xbf16> to vector<512x128xbf16>
    %c0_2 = arith.constant 0 : index
    %c0_3 = arith.constant 0 : index
    %2 = vector.load %arg3[%c0_2, %c0_3] : memref<128x128xbf16, #tpu.memory_space<vmem>>, vector<128x128xbf16>
    %cst = arith.constant dense<0.000000e+00> : vector<512x128xf32>
    %3 = tpu.matmul %1, %2, %cst {dimension_numbers = #tpu.dot_dimension_numbers<[1], [0], [0], [1], [0, 0, 1, 1], [], []>} : vector<512x128xbf16>, vector<128x128xbf16>, vector<512x128xf32> -> vector<512x128xf32>
    %4 = arith.truncf %3 : vector<512x128xf32> to vector<512x128xbf16>
    %c0_4 = arith.constant 0 : index
    %c0_5 = arith.constant 0 : index
    %c0_6 = arith.constant 0 : index
    %5 = vector.load %arg5[%c0_4, %c0_5, %c0_6] : memref<1x512x128xbf16, #tpu.memory_space<vmem>>, vector<1x512x128xbf16>
    %6 = vector.shape_cast %5 : vector<1x512x128xbf16> to vector<512x128xbf16>
    %7 = vector.shape_cast %4 : vector<512x128xbf16> to vector<1x512x128xbf16>
    tpu.vector_store %arg5[%c0_4, %c0_5, %c0_6], %7 {strides = array<i32>} : memref<1x512x128xbf16, #tpu.memory_space<vmem>>, vector<1x512x128xbf16>,
    %c0_7 = arith.constant 0 : index
    %c0_8 = arith.constant 0 : index
    %8 = vector.load %arg4[%c0_7, %c0_8] : memref<128x128xbf16, #tpu.memory_space<vmem>>, vector<128x128xbf16>
    %cst_9 = arith.constant dense<0.000000e+00> : vector<512x128xf32>
    %9 = tpu.matmul %1, %8, %cst_9 {dimension_numbers = #tpu.dot_dimension_numbers<[1], [0], [0], [1], [0, 0, 1, 1], [], []>} : vector<512x128xbf16>, vector<128x128xbf16>, vector<512x128xf32> -> vector<512x128xf32>
    %10 = arith.truncf %9 : vector<512x128xf32> to vector<512x128xbf16>
    %c0_10 = arith.constant 0 : index
    %c0_11 = arith.constant 0 : index
    %c0_12 = arith.constant 0 : index
    %11 = vector.load %arg6[%c0_10, %c0_11, %c0_12] : memref<1x512x128xbf16, #tpu.memory_space<vmem>>, vector<1x512x128xbf16>
    %12 = vector.shape_cast %11 : vector<1x512x128xbf16> to vector<512x128xbf16>
    %13 = vector.shape_cast %10 : vector<512x128xbf16> to vector<1x512x128xbf16>
    tpu.vector_store %arg6[%c0_10, %c0_11, %c0_12], %13 {strides = array<i32>} : memref<1x512x128xbf16, #tpu.memory_space<vmem>>, vector<1x512x128xbf16>,
    return
  }
  func.func @transform_0(%arg0: i32, %arg1: i32) -> (i32, i32, i32) {
    %c0_i32 = arith.constant 0 : i32
    %c0_i32_0 = arith.constant 0 : i32
    return %arg0, %arg1, %c0_i32 : i32, i32, i32
  }
  func.func @transform_1(%arg0: i32, %arg1: i32) -> (i32, i32) {
    %c0_i32 = arith.constant 0 : i32
    %c0_i32_0 = arith.constant 0 : i32
    %c0_i32_1 = arith.constant 0 : i32
    return %c0_i32, %c0_i32_0 : i32, i32
  }
  func.func @transform_2(%arg0: i32, %arg1: i32) -> (i32, i32) {
    %c0_i32 = arith.constant 0 : i32
    %c0_i32_0 = arith.constant 0 : i32
    %c0_i32_1 = arith.constant 0 : i32
    return %c0_i32, %c0_i32_0 : i32, i32
  }
  func.func @transform_3(%arg0: i32, %arg1: i32) -> (i32, i32, i32) {
    %c0_i32 = arith.constant 0 : i32
    %c0_i32_0 = arith.constant 0 : i32
    return %arg0, %arg1, %c0_i32 : i32, i32, i32
  }
  func.func @transform_4(%arg0: i32, %arg1: i32) -> (i32, i32, i32) {
    %c0_i32 = arith.constant 0 : i32
    %c0_i32_0 = arith.constant 0 : i32
    return %arg0, %arg1, %c0_i32 : i32, i32, i32
  }
}

</mosaic_0001>

<bundles_post_ra>
// kernel: tpu_custom_call.1
= control target key start
LH: loop header
LB: loop body
LE: loop exit
PB: predicated region body
PF: predicated region fallthrough
CT: control target
= control target key end

     0   :  { %s3787_s0 = inlined_call_operand.hbm [shape: bf16[2,1024,128], index: 0, kind: input, shape index: {}]   ;;  %s3788_s1 = inlined_call_operand.hbm [shape: bf16[128,128], index: 1, kind: input, shape index: {}]   ;;  %s3789_s2 = inlined_call_operand.hbm [shape: bf16[128,128], index: 2, kind: input, shape index: {}]   ;;  %s3790_s3 = inlined_call_operand.hbm [shape: bf16[2,1024,128], index: 3, kind: output, shape index: {0}]   ;;  %s3791_s4 = inlined_call_operand.hbm [shape: bf16[2,1024,128], index: 4, kind: output, shape index: {1}]  }
   0x1   :  { %3801 = sst [smem:[#allocation19_spill]] %s3788_s1 }
   0x2   :  { %3802 = sst [smem:[#allocation20_spill]] %s3789_s2 }
   0x3   :  { %3803 = sst [smem:[#allocation21_spill]] %s3791_s4 }
   0x4   :  { %10 = vsyncpa [#allocation3], 0 }
   0x5   :  { %12 = vsyncpa [#allocation3 + $0x1], 0 }
   0x6   :  { %13 = vsyncpa [#allocation6], 0 }
   0x7   :  { %14 = vsyncpa [#allocation4], 0 }
   0x8   :  { %16 = vsyncpa [#allocation4 + $0x1], 0 }
   0x9   :  { %17 = vsyncpa [#allocation10], 0 }
   0xa   :  { %19 = vsyncpa [#allocation10 + $0x1], 0  ;;  %s3419_s15 = smov 0   ;;  %s3421_s16 = smov 0  }
   0xb   :  { %s3423_s17 = smov 0   ;;  %s3425_s18 = smov 0  }
   0xc   :  { %s3427_s19 = smov 0   ;;  %s3429_s20 = smov 0  }
   0xd   :  { %s3431_s21 = smov 0   ;;  %s3433_s22 = smov 0  }
   0xe LB: > { %3804 = sst [smem:[#allocation15_spill]] %s3355_s15  ;;  %s2065_s23 = sadd.s32 4294967295, %s3383_s22   ;;  %s3383_s22 = sphi %s3433_s22, %s25_s22   ;;  %s3379_s21 = sphi %s3431_s21, %s3834_s21   ;;  %s3375_s20 = sphi %s3429_s20, %s3833_s20   ;;  %s3371_s19 = sphi %s3427_s19, %s3832_s19   ;;  %s3367_s18 = sphi %s3425_s18, %s3831_s18   ;;  %s3363_s17 = sphi %s3423_s17, %s3830_s17   ;;  %s3359_s16 = sphi %s3421_s16, %s3829_s16   ;;  %s3355_s15 = sphi %s3419_s15, %s3828_s15  }
   0xf   : > { %s2066_s24 = sadd.s32 4294967294, %s3383_s22   ;;  %p59_p0 = scmp.ne.s32.totalorder %s3359_s16, %s3355_s15 }
  0x10   : > { %p3463_p1 = scmp.eq.s32.totalorder %s2065_s23, 0  ;;  %p3467_p2 = scmp.eq.s32.totalorder %s2065_s23, 3 }
  0x11   : > { %p133_p3 = scmp.eq.s32.totalorder %s2066_s24, 3  ;;  %p2067_p5 = scmp.ge.s32.totalorder %s3383_s22, 1 }
  0x12   : > { %p3473_p4 = por %p3463_p1, %p59_p0  ;;  %p168_p7 = scmp.lt.s32.totalorder %s3383_s22, 5 }
  0x13   : > { %p3478_p6 = por %p133_p3, %p59_p0  ;;  %s3385_s30 = smov [#allocation5]  }
  0x14   : > { %p3483_p8 = pnand %p2067_p5, %p168_p7  ;;  %s180_s5 = sshll.u32 %s3385_s30, 4  ;;  %s181_s5 = int_to_ptr.vmem [resolvable:$true] %s180_s5 }
  0x15   : > { %s3808_s28 = scalar_select %p3478_p6, 1, 0 }
  0x16   : > { %p3031_p9 = pneg %p3483_p8  ;;  %s3386_s7 = smov [#allocation7]  }
  0x17   : > { %3809 = sst [smem:[#allocation16_spill]] %s3808_s28  ;;  %s193_s8 = sshll.u32 %s3386_s7, 4  ;;  %s194_s8 = int_to_ptr.vmem [resolvable:$true] %s193_s8 }
  0x18   : > { %p3491_p10 = pnand %p3031_p9, %p3463_p1  ;;  %s3184_s9 = scalar_lea.vmem %s181_s5, 1024 }
  0x19   : > { %p3185_p12 = scmp.ne.s32.totalorder %s181_s5, %s3184_s9  ;;  %p3192_p3 = scmp.lt.s32.totalorder %s181_s5, %s181_s5 }
  0x1a   : > { %p3175_p11 = pneg %p3491_p10  ;;  %p3193_p5 = scmp.lt.s32.totalorder %s3184_s9, %s3184_s9 }
  0x1c   : > { %p3187_p13 = pnand %p3185_p12, %p3175_p11  ;;  %p3194_p7 = por %p3193_p5, %p3192_p3 }
  0x1e   : > { %p3188_p0 = pneg %p3187_p13 }
  0x20   : > { %p3195_p9 = pnand %p3194_p7, %p3188_p0 }
  0x22   : > { %3198 = shalt.err (!%p3195_p9)
}
  0x23   : > { %s3792_s10 = smov 64   ;;  %s3793_s11 = smov 4  }
  0x24   : > { %s3812_s1 = sld [smem:[#allocation19_spill]]  ;;  %s3210_s14 = scalar_lea.vmem %s194_s8, 1024 }
  0x25   : > { %p3211_p12 = scmp.ne.s32.totalorder %s194_s8, %s3210_s14  ;;  %p3218_p0 = scmp.lt.s32.totalorder %s194_s8, %s194_s8 }
  0x26   : > { %p3219_p5 = scmp.lt.s32.totalorder %s3210_s14, %s3210_s14 }
  0x27   : > { %p3213_p13 = pnand %p3211_p12, %p3175_p11 }
  0x28   : > { %p3220_p7 = por %p3219_p5, %p3218_p0 }
  0x29   : > { %p3214_p3 = pneg %p3213_p13 }
  0x2a   : > { %3034 = dma.hbm_to_vmem [thread:$0]  (!%p3491_p10), %s3812_s1, 1024, %s181_s5, [#allocation6], %s3792_s10, %s3792_s10, %s3793_s11  }
  0x2b   : > { %p3221_p9 = pnand %p3220_p7, %p3214_p3 }
  0x2d   : > { %3224 = shalt.err (!%p3221_p9)
}
  0x2e   : > { %s3813_s2 = sld [smem:[#allocation20_spill]]  ;;  %s34_s30 = sadd.s32 1, %s3375_s20 }
  0x2f   : > { %s37_s5 = sadd.s32 1, %s3379_s21  ;;  %p35_p11 = scmp.ge.s32.totalorder %s34_s30, 2 }
  0x30   : > { %s46_s6 = sadd.s32 1, %s3363_s17  ;;  %p53_p12 = scmp.ne.s32.totalorder %s3363_s17, %s3359_s16 }
  0x31   : > { %p54_p13 = scmp.eq.s32.totalorder %s3383_s22, 0  ;;  %s3836_s30 = smov (%p35_p11, %s34_s30), 0 }
  0x32   : > { %3814 = sst [smem:[#allocation17_spill]] %s3836_s30  ;;  %s3838_s5 = smov (!%p35_p11, %s37_s5), %s3379_s21 }
  0x33   : > { %s42_s7 = ssub.s32 %s3375_s20, %s3836_s30  ;;  %p3530_p3 = por %p54_p13, %p53_p12 }
  0x34   : > { %3037 = dma.hbm_to_vmem [thread:$0]  (!%p3491_p10), %s3813_s2, 1024, %s194_s8, [#allocation6], %s3792_s10, %s3792_s10, %s3793_s11  }
  0x35   : > { %p39_p10 = scmp.ge.s32.totalorder %s3838_s5, 2  ;;  %p3536_p0 = por %p3467_p2, %p53_p12 }
  0x36   : > { %p3051_p5 = scmp.lt.s32.totalorder %s3383_s22, 4  ;;  %s207_s12 = sand.u32 1, %s3363_s17  }
  0x37   : > { %s3816_s8 = scalar_select %p3536_p0, 1, 0 }
  0x38   : > { %s3840_s5 = smov (%p39_p10, %s3838_s5), 0  ;;  %s2071_s13 = sshll.u32 %s207_s12, 8 }
  0x39   : > { %3817 = sst [smem:[#allocation18_spill]] %s3816_s8  ;;  %s41_s14 = ssub.s32 %s3379_s21, %s3840_s5 }
  0x3a   : > { %s43_s23 = sor.u32 %s42_s7, %s41_s14  ;;  %s2072_s24 = sshll.u32 %s3375_s20, 6 }
  0x3b   : > { %p44_p7 = scmp.eq.s32.totalorder %s43_s23, 0  ;;  %s2073_s10 = sshll.u32 %s3379_s21, 7 }
  0x3c   : > { %s217_s11 = sadd.s32 %s2073_s10, %s2072_s24  ;;  %s211_s1 = scalar_lea.vmem [#allocation2], %s2071_s13 }
  0x3d   : > { %s220_s26 = sshll.u32 %s211_s1, 4  ;;  %s2074_s30 = sshll.u32 %s217_s11, 6  ;;  %s221_s26 = int_to_ptr.vmem [resolvable:$true] %s220_s26 }
  0x3e   : > { %s3549_s2 = scalar_select %p44_p7, %s3363_s17, %s46_s6  }
  0x3f   : > { %s219_s4 = scalar_lea.hbm %s3787_s0, %s2074_s30  ;;  %p3558_p2 = pnand %p3051_p5, %p3530_p3 }
  0x40   : > { %s208_s7 = scalar_lea.sflag [#allocation3], %s207_s12  ;;  %s3238_s10 = scalar_lea.vmem %s221_s26, 4096 }
  0x41   : > { %p3227_p9 = pneg %p3558_p2  ;;  %p3239_p11 = scmp.ne.s32.totalorder %s221_s26, %s3238_s10 }
  0x42   : > { %s3389_s1 = smov [#allocation2]  }
  0x43   : > { %p3241_p12 = pnand %p3239_p11, %p3227_p9  ;;  %s3243_s11 = sshll.u32 %s3389_s1, 4  ;;  %s3244_s11 = int_to_ptr.vmem [resolvable:$false] %s3243_s11 }
  0x44   : > { %s3245_s6 = scalar_lea.vmem %s3244_s11, 8192  ;;  %p3246_p10 = scmp.lt.s32.totalorder %s221_s26, %s3244_s11 }
  0x45   : > { %p3242_p13 = pneg %p3241_p12  ;;  %p3247_p7 = scmp.lt.s32.totalorder %s3245_s6, %s3238_s10 }
  0x47   : > { %p3248_p6 = por %p3247_p7, %p3246_p10 }
  0x49   : > { %p3249_p0 = pnand %p3248_p6, %p3242_p13 }
  0x4b   : > { %3252 = shalt.err (!%p3249_p0)
}
  0x4c   : > { %s3819_s15 = smov 4   ;;  %s3820_s28 = smov 64  }
  0x4d   : > { %3041 = dma.hbm_to_vmem [thread:$0]  (!%p3558_p2), %s219_s4, 4096, %s221_s26, %s208_s7, %s3820_s28, %s3820_s28, %s3819_s15  }
  0x4e   : > { %232 = sbr.rel (%p3483_p8) target bundleno = 477 (0x1dd), region = 32  ;;  %s3572_s30 = sand.u32 (!%p3483_p8), 1, %s3359_s16  }
  0x4f   : > { %s3575_s9 = sshll.u32 (!%p3483_p8), %s3572_s30, 8  ;;  %s235_s12 = scalar_lea.sflag (!%p3483_p8), [#allocation3], %s3572_s30 }
  0x50   : > { %s3579_s13 = scalar_lea.vmem (!%p3483_p8), [#allocation2], %s3575_s9 }
  0x53   : > { %3338 = dma.done.wait (%p3473_p4), %s235_s12, 4096  }
  0x54   : > { %3340 = vsyncadd (%p3473_p4), %s235_s12, 4294963200 }
  0x55   : > { %3342 = dma.done.wait (%p3463_p1), [#allocation6], 2048  }
  0x56   : > { %3344 = vsyncadd (%p3463_p1), [#allocation6], 4294965248  ;;  %v3125_v0 = vld [vmem:[#allocation5 + $0x38] sm:$0xff]   ;;  %v3127_v2 = vld [vmem:[#allocation5 + $0x30] sm:$0xff]   ;;  %s3622_s4 = scalar_lea.vmem [#allocation8], %s3575_s9  ;;  %s3626_s25 = scalar_lea.vmem [#allocation9], %s3575_s9 }
  0x57   : > { %v3126_v1 = vld [vmem:[#allocation7 + $0x38] sm:$0xff]   ;;  %2857 = vmatprep.subr.bf16.mxu0 %v3125_v0  ;;  %v3128_v3 = vld [vmem:[#allocation7 + $0x30] sm:$0xff]   ;;  %v3129_v4 = vld [vmem:[#allocation5 + $0x28] sm:$0xff]   ;;  %s2259_s27 = sshll.u32 %s3367_s18, 6  ;;  %s2260_s29 = sshll.u32 %s3371_s19, 7 }
  0x58   : > { %2937 = vmatprep.subr.bf16.mxu1 %v3126_v1  ;;  %2858 = vmatpush3.bf16.msra.mxu0 %v3125_v0  ;;  %v3130_v5 = vld [vmem:[#allocation7 + $0x28] sm:$0xff]   ;;  %v3131_v6 = vld [vmem:[#allocation5 + $0x20] sm:$0xff]   ;;  %v3133_v8 = vld [vmem:[#allocation5 + $0x18] sm:$0xff]   ;;  %s1900_s8 = sadd.s32 %s2260_s29, %s2259_s27  ;;  %s1903_s19 = sshll.u32 %s3622_s4, 4  ;;  %s3696_s19 = int_to_ptr.vmem [resolvable:$true] %s1903_s19 }
  0x59   : > { %2938 = vmatpush3.bf16.msra.mxu1 %v3126_v1  ;;  %2859 = vmatprep.subr.bf16.mxu0 %v3127_v2  ;;  %v3132_v7 = vld [vmem:[#allocation7 + $0x20] sm:$0xff]   ;;  %v3134_v9 = vld [vmem:[#allocation7 + $0x18] sm:$0xff]   ;;  %v3135_v10 = vld [vmem:[#allocation5 + $0x10] sm:$0xff]   ;;  %s2261_s18 = sshll.u32 %s1900_s8, 6  ;;  %s1921_s26 = sshll.u32 %s3626_s25, 4  ;;  %s3705_s26 = int_to_ptr.vmem [resolvable:$true] %s1921_s26 }
  0x5a   : > { %2939 = vmatprep.subr.bf16.mxu1 %v3128_v3  ;;  %v3141_v11 = vld [vmem:[%s3579_s13] sm:$0xff]   ;;  %v3136_v12 = vld [vmem:[#allocation7 + $0x10] sm:$0xff]   ;;  %v3137_v13 = vld [vmem:[#allocation5 + $0x8] sm:$0xff]   ;;  %s3693_s24 = scalar_lea.hbm %s3790_s3, %s2261_s18  ;;  %s3821_s7 = sld [smem:[#allocation18_spill]] }
  0x5b   : > { %2873 = vmatprep.mubr.bf16.mxu0 %v3141_v11  ;;  %2953 = vmatprep.mubr.bf16.mxu1 %v3141_v11  ;;  %v3138_v14 = vld [vmem:[#allocation7 + $0x8] sm:$0xff]   ;;  %v3139_v15 = vld [vmem:[#allocation5] sm:$0xff]   ;;  %v3143_v18 = vld [vmem:[%s3579_s13 + $0x10] sm:$0xff]   ;;  %s3822_s11 = sld [smem:[#allocation21_spill]]  ;;  %s1883_s15 = scalar_lea.sflag [#allocation4], %s3572_s30 }
  0x5c   : > { %2860 = vmatpush3.bf16.msra.mxu0 %v3127_v2  ;;  %v3140_v16 = vld [vmem:[#allocation7] sm:$0xff]   ;;  %v3142_v17 = vld [vmem:[%s3579_s13 + $0x8] sm:$0xff]   ;;  %v3144_v19 = vld [vmem:[%s3579_s13 + $0x18] sm:$0xff]   ;;  %s3253_s28 = scalar_lea.vmem %s3696_s19, 4096  ;;  %s3390_s9 = smov [#allocation8]  }
  0x5d   : > { %2940 = vmatpush3.bf16.msra.mxu1 %v3128_v3  ;;  %2861 = vmatprep.subr.bf16.mxu0 %v3129_v4  ;;  %v3145_v20 = vld [vmem:[%s3579_s13 + $0x20] sm:$0xff]   ;;  %v3146_v21 = vld [vmem:[%s3579_s13 + $0x28] sm:$0xff]   ;;  %v3147_v22 = vld [vmem:[%s3579_s13 + $0x30] sm:$0xff]   ;;  %p3254_p1 = scmp.ne.s32.totalorder %s3696_s19, %s3253_s28  ;;  %s3257_s12 = sshll.u32 %s3390_s9, 4  ;;  %s3258_s12 = int_to_ptr.vmem [resolvable:$false] %s3257_s12 }
  0x5e   : > { %2941 = vmatprep.subr.bf16.mxu1 %v3130_v5  ;;  %v3148_v23 = vld [vmem:[%s3579_s13 + $0x38] sm:$0xff]   ;;  %v3149_v24 = vld [vmem:[%s3579_s13 + $0x40] sm:$0xff]   ;;  %v3150_v25 = vld [vmem:[%s3579_s13 + $0x48] sm:$0xff]   ;;  %p3260_p3 = scmp.lt.s32.totalorder %s3696_s19, %s3258_s12 }
  0x5f   : > { %v3151_v26 = vld [vmem:[%s3579_s13 + $0x50] sm:$0xff]   ;;  %v3152_v27 = vld [vmem:[%s3579_s13 + $0x58] sm:$0xff]   ;;  %v3153_v28 = vld [vmem:[%s3579_s13 + $0x60] sm:$0xff]  }
  0x60   : > { %2862 = vmatpush3.bf16.msra.mxu0 %v3129_v4  ;;  %v3154_v29 = vld [vmem:[%s3579_s13 + $0x68] sm:$0xff]   ;;  %v3155_v30 = vld [vmem:[%s3579_s13 + $0x70] sm:$0xff]   ;;  %v3156_v31 = vld [vmem:[%s3579_s13 + $0x78] sm:$0xff]   ;;  %p3823_p4 = scmp.ne.s32.totalorder %s3821_s7, 0 }
  0x61   : > { %2942 = vmatpush3.bf16.msra.mxu1 %v3130_v5  ;;  %2863 = vmatprep.subr.bf16.mxu0 %v3131_v6  ;;  %v3157_v32 = vld [vmem:[%s3579_s13 + $0x80] sm:$0xff]   ;;  %v3158_v33 = vld [vmem:[%s3579_s13 + $0x88] sm:$0xff]   ;;  %v3159_v34 = vld [vmem:[%s3579_s13 + $0x90] sm:$0xff]   ;;  %s3703_s6 = scalar_lea.hbm %s3822_s11, %s2261_s18 }
  0x62   : > { %2943 = vmatprep.subr.bf16.mxu1 %v3132_v7  ;;  %v3160_v35 = vld [vmem:[%s3579_s13 + $0x98] sm:$0xff]   ;;  %v3161_v36 = vld [vmem:[%s3579_s13 + $0xa0] sm:$0xff]   ;;  %v3162_v37 = vld [vmem:[%s3579_s13 + $0xa8] sm:$0xff]   ;;  %p3255_p6 = pnand %p3254_p1, %p3823_p4 }
  0x63   : > { %v3163_v38 = vld [vmem:[%s3579_s13 + $0xb0] sm:$0xff]   ;;  %v3164_v39 = vld [vmem:[%s3579_s13 + $0xb8] sm:$0xff]   ;;  %v3165_v40 = vld [vmem:[%s3579_s13 + $0xc0] sm:$0xff]  }
  0x64   : > { %2864 = vmatpush3.bf16.msra.mxu0 %v3131_v6  ;;  %v3166_v41 = vld [vmem:[%s3579_s13 + $0xc8] sm:$0xff]   ;;  %v3167_v42 = vld [vmem:[%s3579_s13 + $0xd0] sm:$0xff]   ;;  %v3168_v43 = vld [vmem:[%s3579_s13 + $0xd8] sm:$0xff]   ;;  %p3256_p8 = pneg %p3255_p6 }
  0x65   : > { %2944 = vmatpush3.bf16.msra.mxu1 %v3132_v7  ;;  %2865 = vmatprep.subr.bf16.mxu0 %v3133_v8  ;;  %v3169_v44 = vld [vmem:[%s3579_s13 + $0xe0] sm:$0xff]   ;;  %v3170_v45 = vld [vmem:[%s3579_s13 + $0xe8] sm:$0xff]   ;;  %v3171_v46 = vld [vmem:[%s3579_s13 + $0xf0] sm:$0xff]  }
  0x66   : > { %2945 = vmatprep.subr.bf16.mxu1 %v3134_v9  ;;  %v3172_v47 = vld [vmem:[%s3579_s13 + $0xf8] sm:$0xff]   ;;  %s3259_s13 = scalar_lea.vmem %s3258_s12, 8192 }
  0x67   : > { %p3261_p0 = scmp.lt.s32.totalorder %s3259_s13, %s3253_s28 }
  0x68   : > { %2866 = vmatpush3.bf16.msra.mxu0 %v3133_v8 }
  0x69   : > { %2946 = vmatpush3.bf16.msra.mxu1 %v3134_v9  ;;  %2867 = vmatprep.subr.bf16.mxu0 %v3135_v10  ;;  %p3262_p5 = por %p3261_p0, %p3260_p3 }
  0x6a   : > { %2947 = vmatprep.subr.bf16.mxu1 %v3136_v12 }
  0x6b   : > { %p3263_p2 = pnand %p3262_p5, %p3256_p8 }
  0x6c   : > { %2868 = vmatpush3.bf16.msra.mxu0 %v3135_v10 }
  0x6d   : > { %2948 = vmatpush3.bf16.msra.mxu1 %v3136_v12  ;;  %2869 = vmatprep.subr.bf16.mxu0 %v3137_v13 }
  0x6e   : > { %2949 = vmatprep.subr.bf16.mxu1 %v3138_v14 }
  0x70   : > { %2870 = vmatpush3.bf16.msra.mxu0 %v3137_v13 }
  0x71   : > { %2950 = vmatpush3.bf16.msra.mxu1 %v3138_v14  ;;  %2871 = vmatprep.subr.bf16.mxu0 %v3139_v15 }
  0x72   : > { %2951 = vmatprep.subr.bf16.mxu1 %v3140_v16 }
  0x74   : > { %2872 = vmatpush3.bf16.msra.mxu0 %v3139_v15 }
  0x75   : > { %2952 = vmatpush3.bf16.msra.mxu1 %v3140_v16 }
  0x77   : > { %2874 = vmatmul.mubr.bf16.vlgmr.msra.gmra.mxu0 %v3142_v17 }
  0x78   : > { %2954 = vmatmul.mubr.bf16.vlgmr.msra.gmra.mxu1 %v3142_v17  ;;  %2877 = vmatprep.mubr.bf16.mxu0 %v3143_v18 }
  0x79   : > { %2957 = vmatprep.mubr.bf16.mxu1 %v3143_v18 }
  0x7f   : > { %2878 = vmatmul.mubr.bf16.gmra.mxu0 %v3144_v19 }
  0x80   : > { %2958 = vmatmul.mubr.bf16.gmra.mxu1 %v3144_v19  ;;  %2881 = vmatprep.mubr.bf16.mxu0 %v3145_v20 }
  0x81   : > { %2961 = vmatprep.mubr.bf16.mxu1 %v3145_v20 }
  0x87   : > { %2882 = vmatmul.mubr.bf16.gmra.mxu0 %v3146_v21 }
  0x88   : > { %2962 = vmatmul.mubr.bf16.gmra.mxu1 %v3146_v21  ;;  %2885 = vmatprep.mubr.bf16.mxu0 %v3147_v22 }
  0x89   : > { %2965 = vmatprep.mubr.bf16.mxu1 %v3147_v22 }
  0x8f   : > { %2886 = vmatmul.mubr.bf16.gmra.mxu0 %v3148_v23 }
  0x90   : > { %2966 = vmatmul.mubr.bf16.gmra.mxu1 %v3148_v23  ;;  %2889 = vmatprep.mubr.bf16.mxu0 %v3149_v24 }
  0x91   : > { %2969 = vmatprep.mubr.bf16.mxu1 %v3149_v24 }
  0x97   : > { %2890 = vmatmul.mubr.bf16.gmra.mxu0 %v3150_v25 }
  0x98   : > { %2970 = vmatmul.mubr.bf16.gmra.mxu1 %v3150_v25  ;;  %2893 = vmatprep.mubr.bf16.mxu0 %v3151_v26 }
  0x99   : > { %2973 = vmatprep.mubr.bf16.mxu1 %v3151_v26 }
  0x9f   : > { %2894 = vmatmul.mubr.bf16.gmra.mxu0 %v3152_v27 }
  0xa0   : > { %2974 = vmatmul.mubr.bf16.gmra.mxu1 %v3152_v27  ;;  %2897 = vmatprep.mubr.bf16.mxu0 %v3153_v28 }
  0xa1   : > { %2977 = vmatprep.mubr.bf16.mxu1 %v3153_v28 }
  0xa7   : > { %2898 = vmatmul.mubr.bf16.gmra.mxu0 %v3154_v29 }
  0xa8   : > { %2978 = vmatmul.mubr.bf16.gmra.mxu1 %v3154_v29  ;;  %2901 = vmatprep.mubr.bf16.mxu0 %v3155_v30 }
  0xa9   : > { %2981 = vmatprep.mubr.bf16.mxu1 %v3155_v30 }
  0xaf   : > { %2902 = vmatmul.mubr.bf16.gmra.mxu0 %v3156_v31 }
  0xb0   : > { %2982 = vmatmul.mubr.bf16.gmra.mxu1 %v3156_v31  ;;  %2905 = vmatprep.mubr.bf16.mxu0 %v3157_v32 }
  0xb1   : > { %2985 = vmatprep.mubr.bf16.mxu1 %v3157_v32 }
  0xb7   : > { %2906 = vmatmul.mubr.bf16.gmra.mxu0 %v3158_v33 }
  0xb8   : > { %2986 = vmatmul.mubr.bf16.gmra.mxu1 %v3158_v33  ;;  %2909 = vmatprep.mubr.bf16.mxu0 %v3159_v34 }
  0xb9   : > { %2989 = vmatprep.mubr.bf16.mxu1 %v3159_v34 }
  0xbf   : > { %2910 = vmatmul.mubr.bf16.gmra.mxu0 %v3160_v35 }
  0xc0   : > { %2990 = vmatmul.mubr.bf16.gmra.mxu1 %v3160_v35  ;;  %2913 = vmatprep.mubr.bf16.mxu0 %v3161_v36 }
  0xc1   : > { %2993 = vmatprep.mubr.bf16.mxu1 %v3161_v36 }
  0xc7   : > { %2914 = vmatmul.mubr.bf16.gmra.mxu0 %v3162_v37 }
  0xc8   : > { %2994 = vmatmul.mubr.bf16.gmra.mxu1 %v3162_v37  ;;  %2917 = vmatprep.mubr.bf16.mxu0 %v3163_v38 }
  0xc9   : > { %2997 = vmatprep.mubr.bf16.mxu1 %v3163_v38 }
  0xcf   : > { %2918 = vmatmul.mubr.bf16.gmra.mxu0 %v3164_v39 }
  0xd0   : > { %2998 = vmatmul.mubr.bf16.gmra.mxu1 %v3164_v39  ;;  %2921 = vmatprep.mubr.bf16.mxu0 %v3165_v40 }
  0xd1   : > { %3001 = vmatprep.mubr.bf16.mxu1 %v3165_v40 }
  0xd7   : > { %2922 = vmatmul.mubr.bf16.gmra.mxu0 %v3166_v41 }
  0xd8   : > { %3002 = vmatmul.mubr.bf16.gmra.mxu1 %v3166_v41  ;;  %2925 = vmatprep.mubr.bf16.mxu0 %v3167_v42 }
  0xd9   : > { %3005 = vmatprep.mubr.bf16.mxu1 %v3167_v42 }
  0xdf   : > { %2926 = vmatmul.mubr.bf16.gmra.mxu0 %v3168_v43 }
  0xe0   : > { %3006 = vmatmul.mubr.bf16.gmra.mxu1 %v3168_v43  ;;  %2929 = vmatprep.mubr.bf16.mxu0 %v3169_v44 }
  0xe1   : > { %3009 = vmatprep.mubr.bf16.mxu1 %v3169_v44 }
  0xe7   : > { %2930 = vmatmul.mubr.bf16.gmra.mxu0 %v3170_v45 }
  0xe8   : > { %3010 = vmatmul.mubr.bf16.gmra.mxu1 %v3170_v45  ;;  %2933 = vmatprep.mubr.bf16.mxu0 %v3171_v46 }
  0xe9   : > { %3013 = vmatprep.mubr.bf16.mxu1 %v3171_v46 }
  0xef   : > { %2934 = vmatmul.mubr.bf16.gmra.mxu0 %v3172_v47 }
  0xf0   : > { %3014 = vmatmul.mubr.bf16.gmra.mxu1 %v3172_v47 }
 0x137   : > { %v2875_v48 = vpop.f32.mrf.mxu0 }
 0x138   : > { %v2955_v49 = vpop.f32.mrf.mxu1 }
 0x139   : > { %v634_v50 = vpop.f32.mrf.mxu0 }
 0x13a   : > { %v1307_v51 = vpop.f32.mrf.mxu1 }
 0x13b   : > { %v2876_v52 = vpop.f32.mrf.mxu0 }
 0x13c   : > { %v2403_v53 = vpack.c.bf16 %v2876_v52, %v2875_v48  ;;  %v2956_v54 = vpop.f32.mrf.mxu1 }
 0x13d   : > { %v2563_v55 = vpack.c.bf16 %v2956_v54, %v2955_v49  ;;  %v637_v56 = vpop.f32.mrf.mxu0 }
 0x13e   : > { %2715 = vst [vmem:[%s3622_s4 + $0x8] sm:$0xff] %v2403_v53   ;;  %v2398_v57 = vpack.c.bf16 %v637_v56, %v634_v50  ;;  %v1310_v58 = vpop.f32.mrf.mxu1 }
 0x13f   : > { %2746 = vst [vmem:[%s3626_s25 + $0x8] sm:$0xff] %v2563_v55   ;;  %v2558_v59 = vpack.c.bf16 %v1310_v58, %v1307_v51  ;;  %v2879_v60 = vpop.f32.mrf.mxu0 }
 0x140   : > { %2399 = vst [vmem:[%s3622_s4] sm:$0xff] %v2398_v57   ;;  %v2959_v61 = vpop.f32.mrf.mxu1 }
 0x141   : > { %2559 = vst [vmem:[%s3626_s25] sm:$0xff] %v2558_v59   ;;  %v650_v62 = vpop.f32.mrf.mxu0 }
 0x142   : > { %v1323_v63 = vpop.f32.mrf.mxu1 }
 0x143   : > { %v2880_v0 = vpop.f32.mrf.mxu0 }
 0x144   : > { %v2413_v1 = vpack.c.bf16 %v2880_v0, %v2879_v60  ;;  %v2960_v2 = vpop.f32.mrf.mxu1 }
 0x145   : > { %v2573_v3 = vpack.c.bf16 %v2960_v2, %v2959_v61  ;;  %v653_v4 = vpop.f32.mrf.mxu0 }
 0x146   : > { %2717 = vst [vmem:[%s3622_s4 + $0x18] sm:$0xff] %v2413_v1   ;;  %v2408_v5 = vpack.c.bf16 %v653_v4, %v650_v62  ;;  %v1326_v6 = vpop.f32.mrf.mxu1 }
 0x147   : > { %2748 = vst [vmem:[%s3626_s25 + $0x18] sm:$0xff] %v2573_v3   ;;  %v2568_v7 = vpack.c.bf16 %v1326_v6, %v1323_v63  ;;  %v2883_v8 = vpop.f32.mrf.mxu0 }
 0x148   : > { %2716 = vst [vmem:[%s3622_s4 + $0x10] sm:$0xff] %v2408_v5   ;;  %v2963_v9 = vpop.f32.mrf.mxu1 }
 0x149   : > { %2747 = vst [vmem:[%s3626_s25 + $0x10] sm:$0xff] %v2568_v7   ;;  %v666_v10 = vpop.f32.mrf.mxu0 }
 0x14a   : > { %v1339_v11 = vpop.f32.mrf.mxu1 }
 0x14b   : > { %v2884_v12 = vpop.f32.mrf.mxu0 }
 0x14c   : > { %v2423_v13 = vpack.c.bf16 %v2884_v12, %v2883_v8  ;;  %v2964_v14 = vpop.f32.mrf.mxu1 }
 0x14d   : > { %v2583_v15 = vpack.c.bf16 %v2964_v14, %v2963_v9  ;;  %v669_v16 = vpop.f32.mrf.mxu0 }
 0x14e   : > { %2719 = vst [vmem:[%s3622_s4 + $0x28] sm:$0xff] %v2423_v13   ;;  %v2418_v17 = vpack.c.bf16 %v669_v16, %v666_v10  ;;  %v1342_v18 = vpop.f32.mrf.mxu1 }
 0x14f   : > { %2750 = vst [vmem:[%s3626_s25 + $0x28] sm:$0xff] %v2583_v15   ;;  %v2578_v19 = vpack.c.bf16 %v1342_v18, %v1339_v11  ;;  %v2887_v20 = vpop.f32.mrf.mxu0 }
 0x150   : > { %2718 = vst [vmem:[%s3622_s4 + $0x20] sm:$0xff] %v2418_v17   ;;  %v2967_v21 = vpop.f32.mrf.mxu1 }
 0x151   : > { %2749 = vst [vmem:[%s3626_s25 + $0x20] sm:$0xff] %v2578_v19   ;;  %v682_v22 = vpop.f32.mrf.mxu0 }
 0x152   : > { %v1355_v23 = vpop.f32.mrf.mxu1 }
 0x153   : > { %v2888_v24 = vpop.f32.mrf.mxu0 }
 0x154   : > { %v2433_v25 = vpack.c.bf16 %v2888_v24, %v2887_v20  ;;  %v2968_v26 = vpop.f32.mrf.mxu1 }
 0x155   : > { %v2593_v27 = vpack.c.bf16 %v2968_v26, %v2967_v21  ;;  %v685_v28 = vpop.f32.mrf.mxu0 }
 0x156   : > { %2721 = vst [vmem:[%s3622_s4 + $0x38] sm:$0xff] %v2433_v25   ;;  %v2428_v29 = vpack.c.bf16 %v685_v28, %v682_v22  ;;  %v1358_v30 = vpop.f32.mrf.mxu1 }
 0x157   : > { %2752 = vst [vmem:[%s3626_s25 + $0x38] sm:$0xff] %v2593_v27   ;;  %v2588_v31 = vpack.c.bf16 %v1358_v30, %v1355_v23  ;;  %v2891_v32 = vpop.f32.mrf.mxu0 }
 0x158   : > { %2720 = vst [vmem:[%s3622_s4 + $0x30] sm:$0xff] %v2428_v29   ;;  %v2971_v33 = vpop.f32.mrf.mxu1 }
 0x159   : > { %2751 = vst [vmem:[%s3626_s25 + $0x30] sm:$0xff] %v2588_v31   ;;  %v698_v34 = vpop.f32.mrf.mxu0 }
 0x15a   : > { %v1371_v35 = vpop.f32.mrf.mxu1 }
 0x15b   : > { %v2892_v36 = vpop.f32.mrf.mxu0 }
 0x15c   : > { %v2443_v37 = vpack.c.bf16 %v2892_v36, %v2891_v32  ;;  %v2972_v38 = vpop.f32.mrf.mxu1 }
 0x15d   : > { %v2603_v39 = vpack.c.bf16 %v2972_v38, %v2971_v33  ;;  %v701_v40 = vpop.f32.mrf.mxu0 }
 0x15e   : > { %2723 = vst [vmem:[%s3622_s4 + $0x48] sm:$0xff] %v2443_v37   ;;  %v2438_v41 = vpack.c.bf16 %v701_v40, %v698_v34  ;;  %v1374_v42 = vpop.f32.mrf.mxu1 }
 0x15f   : > { %2754 = vst [vmem:[%s3626_s25 + $0x48] sm:$0xff] %v2603_v39   ;;  %v2598_v43 = vpack.c.bf16 %v1374_v42, %v1371_v35  ;;  %v2895_v44 = vpop.f32.mrf.mxu0 }
 0x160   : > { %2722 = vst [vmem:[%s3622_s4 + $0x40] sm:$0xff] %v2438_v41   ;;  %v2975_v45 = vpop.f32.mrf.mxu1 }
 0x161   : > { %2753 = vst [vmem:[%s3626_s25 + $0x40] sm:$0xff] %v2598_v43   ;;  %v714_v46 = vpop.f32.mrf.mxu0 }
 0x162   : > { %v1387_v47 = vpop.f32.mrf.mxu1 }
 0x163   : > { %v2896_v48 = vpop.f32.mrf.mxu0 }
 0x164   : > { %v2453_v49 = vpack.c.bf16 %v2896_v48, %v2895_v44  ;;  %v2976_v50 = vpop.f32.mrf.mxu1 }
 0x165   : > { %v2613_v51 = vpack.c.bf16 %v2976_v50, %v2975_v45  ;;  %v717_v52 = vpop.f32.mrf.mxu0 }
 0x166   : > { %2725 = vst [vmem:[%s3622_s4 + $0x58] sm:$0xff] %v2453_v49   ;;  %v2448_v53 = vpack.c.bf16 %v717_v52, %v714_v46  ;;  %v1390_v54 = vpop.f32.mrf.mxu1 }
 0x167   : > { %2756 = vst [vmem:[%s3626_s25 + $0x58] sm:$0xff] %v2613_v51   ;;  %v2608_v55 = vpack.c.bf16 %v1390_v54, %v1387_v47  ;;  %v2899_v56 = vpop.f32.mrf.mxu0 }
 0x168   : > { %2724 = vst [vmem:[%s3622_s4 + $0x50] sm:$0xff] %v2448_v53   ;;  %v2979_v57 = vpop.f32.mrf.mxu1 }
 0x169   : > { %2755 = vst [vmem:[%s3626_s25 + $0x50] sm:$0xff] %v2608_v55   ;;  %v730_v58 = vpop.f32.mrf.mxu0 }
 0x16a   : > { %v1403_v59 = vpop.f32.mrf.mxu1 }
 0x16b   : > { %v2900_v60 = vpop.f32.mrf.mxu0 }
 0x16c   : > { %v2463_v61 = vpack.c.bf16 %v2900_v60, %v2899_v56  ;;  %v2980_v62 = vpop.f32.mrf.mxu1 }
 0x16d   : > { %v2623_v63 = vpack.c.bf16 %v2980_v62, %v2979_v57  ;;  %v733_v0 = vpop.f32.mrf.mxu0 }
 0x16e   : > { %2727 = vst [vmem:[%s3622_s4 + $0x68] sm:$0xff] %v2463_v61   ;;  %v2458_v1 = vpack.c.bf16 %v733_v0, %v730_v58  ;;  %v1406_v2 = vpop.f32.mrf.mxu1 }
 0x16f   : > { %2758 = vst [vmem:[%s3626_s25 + $0x68] sm:$0xff] %v2623_v63   ;;  %v2618_v3 = vpack.c.bf16 %v1406_v2, %v1403_v59  ;;  %v2903_v4 = vpop.f32.mrf.mxu0 }
 0x170   : > { %2726 = vst [vmem:[%s3622_s4 + $0x60] sm:$0xff] %v2458_v1   ;;  %v2983_v5 = vpop.f32.mrf.mxu1 }
 0x171   : > { %2757 = vst [vmem:[%s3626_s25 + $0x60] sm:$0xff] %v2618_v3   ;;  %v746_v6 = vpop.f32.mrf.mxu0 }
 0x172   : > { %v1419_v7 = vpop.f32.mrf.mxu1 }
 0x173   : > { %v2904_v8 = vpop.f32.mrf.mxu0 }
 0x174   : > { %v2473_v9 = vpack.c.bf16 %v2904_v8, %v2903_v4  ;;  %v2984_v10 = vpop.f32.mrf.mxu1 }
 0x175   : > { %v2633_v11 = vpack.c.bf16 %v2984_v10, %v2983_v5  ;;  %v749_v12 = vpop.f32.mrf.mxu0 }
 0x176   : > { %2729 = vst [vmem:[%s3622_s4 + $0x78] sm:$0xff] %v2473_v9   ;;  %v2468_v13 = vpack.c.bf16 %v749_v12, %v746_v6  ;;  %v1422_v14 = vpop.f32.mrf.mxu1 }
 0x177   : > { %2760 = vst [vmem:[%s3626_s25 + $0x78] sm:$0xff] %v2633_v11   ;;  %v2628_v15 = vpack.c.bf16 %v1422_v14, %v1419_v7  ;;  %v2907_v16 = vpop.f32.mrf.mxu0 }
 0x178   : > { %2728 = vst [vmem:[%s3622_s4 + $0x70] sm:$0xff] %v2468_v13   ;;  %v2987_v17 = vpop.f32.mrf.mxu1 }
 0x179   : > { %2759 = vst [vmem:[%s3626_s25 + $0x70] sm:$0xff] %v2628_v15   ;;  %v762_v18 = vpop.f32.mrf.mxu0 }
 0x17a   : > { %v1435_v19 = vpop.f32.mrf.mxu1 }
 0x17b   : > { %v2908_v20 = vpop.f32.mrf.mxu0 }
 0x17c   : > { %v2483_v21 = vpack.c.bf16 %v2908_v20, %v2907_v16  ;;  %v2988_v22 = vpop.f32.mrf.mxu1 }
 0x17d   : > { %v2643_v23 = vpack.c.bf16 %v2988_v22, %v2987_v17  ;;  %v765_v24 = vpop.f32.mrf.mxu0 }
 0x17e   : > { %2731 = vst [vmem:[%s3622_s4 + $0x88] sm:$0xff] %v2483_v21   ;;  %v2478_v25 = vpack.c.bf16 %v765_v24, %v762_v18  ;;  %v1438_v26 = vpop.f32.mrf.mxu1 }
 0x17f   : > { %2762 = vst [vmem:[%s3626_s25 + $0x88] sm:$0xff] %v2643_v23   ;;  %v2638_v27 = vpack.c.bf16 %v1438_v26, %v1435_v19  ;;  %v2911_v28 = vpop.f32.mrf.mxu0 }
 0x180   : > { %2730 = vst [vmem:[%s3622_s4 + $0x80] sm:$0xff] %v2478_v25   ;;  %v2991_v29 = vpop.f32.mrf.mxu1 }
 0x181   : > { %2761 = vst [vmem:[%s3626_s25 + $0x80] sm:$0xff] %v2638_v27   ;;  %v778_v30 = vpop.f32.mrf.mxu0 }
 0x182   : > { %v1451_v31 = vpop.f32.mrf.mxu1 }
 0x183   : > { %v2912_v32 = vpop.f32.mrf.mxu0 }
 0x184   : > { %v2493_v33 = vpack.c.bf16 %v2912_v32, %v2911_v28  ;;  %v2992_v34 = vpop.f32.mrf.mxu1 }
 0x185   : > { %v2653_v35 = vpack.c.bf16 %v2992_v34, %v2991_v29  ;;  %v781_v36 = vpop.f32.mrf.mxu0 }
 0x186   : > { %2733 = vst [vmem:[%s3622_s4 + $0x98] sm:$0xff] %v2493_v33   ;;  %v2488_v37 = vpack.c.bf16 %v781_v36, %v778_v30  ;;  %v1454_v38 = vpop.f32.mrf.mxu1 }
 0x187   : > { %2764 = vst [vmem:[%s3626_s25 + $0x98] sm:$0xff] %v2653_v35   ;;  %v2648_v39 = vpack.c.bf16 %v1454_v38, %v1451_v31  ;;  %v2915_v40 = vpop.f32.mrf.mxu0 }
 0x188   : > { %2732 = vst [vmem:[%s3622_s4 + $0x90] sm:$0xff] %v2488_v37   ;;  %v2995_v41 = vpop.f32.mrf.mxu1 }
 0x189   : > { %2763 = vst [vmem:[%s3626_s25 + $0x90] sm:$0xff] %v2648_v39   ;;  %v794_v42 = vpop.f32.mrf.mxu0 }
 0x18a   : > { %v1467_v43 = vpop.f32.mrf.mxu1 }
 0x18b   : > { %v2916_v44 = vpop.f32.mrf.mxu0 }
 0x18c   : > { %v2503_v45 = vpack.c.bf16 %v2916_v44, %v2915_v40  ;;  %v2996_v46 = vpop.f32.mrf.mxu1 }
 0x18d   : > { %v2663_v47 = vpack.c.bf16 %v2996_v46, %v2995_v41  ;;  %v797_v48 = vpop.f32.mrf.mxu0 }
 0x18e   : > { %2735 = vst [vmem:[%s3622_s4 + $0xa8] sm:$0xff] %v2503_v45   ;;  %v2498_v49 = vpack.c.bf16 %v797_v48, %v794_v42  ;;  %v1470_v50 = vpop.f32.mrf.mxu1 }
 0x18f   : > { %2766 = vst [vmem:[%s3626_s25 + $0xa8] sm:$0xff] %v2663_v47   ;;  %v2658_v51 = vpack.c.bf16 %v1470_v50, %v1467_v43  ;;  %v2919_v52 = vpop.f32.mrf.mxu0 }
 0x190   : > { %2734 = vst [vmem:[%s3622_s4 + $0xa0] sm:$0xff] %v2498_v49   ;;  %v2999_v53 = vpop.f32.mrf.mxu1 }
 0x191   : > { %2765 = vst [vmem:[%s3626_s25 + $0xa0] sm:$0xff] %v2658_v51   ;;  %v810_v54 = vpop.f32.mrf.mxu0 }
 0x192   : > { %v1483_v55 = vpop.f32.mrf.mxu1 }
 0x193   : > { %v2920_v56 = vpop.f32.mrf.mxu0 }
 0x194   : > { %v2513_v57 = vpack.c.bf16 %v2920_v56, %v2919_v52  ;;  %v3000_v58 = vpop.f32.mrf.mxu1 }
 0x195   : > { %v2673_v59 = vpack.c.bf16 %v3000_v58, %v2999_v53  ;;  %v813_v60 = vpop.f32.mrf.mxu0 }
 0x196   : > { %2737 = vst [vmem:[%s3622_s4 + $0xb8] sm:$0xff] %v2513_v57   ;;  %v2508_v61 = vpack.c.bf16 %v813_v60, %v810_v54  ;;  %v1486_v62 = vpop.f32.mrf.mxu1 }
 0x197   : > { %2768 = vst [vmem:[%s3626_s25 + $0xb8] sm:$0xff] %v2673_v59   ;;  %v2668_v63 = vpack.c.bf16 %v1486_v62, %v1483_v55  ;;  %v2923_v0 = vpop.f32.mrf.mxu0 }
 0x198   : > { %2736 = vst [vmem:[%s3622_s4 + $0xb0] sm:$0xff] %v2508_v61   ;;  %v3003_v1 = vpop.f32.mrf.mxu1 }
 0x199   : > { %2767 = vst [vmem:[%s3626_s25 + $0xb0] sm:$0xff] %v2668_v63   ;;  %v826_v2 = vpop.f32.mrf.mxu0 }
 0x19a   : > { %v1499_v3 = vpop.f32.mrf.mxu1 }
 0x19b   : > { %v2924_v4 = vpop.f32.mrf.mxu0 }
 0x19c   : > { %v2523_v5 = vpack.c.bf16 %v2924_v4, %v2923_v0  ;;  %v3004_v6 = vpop.f32.mrf.mxu1 }
 0x19d   : > { %v2683_v7 = vpack.c.bf16 %v3004_v6, %v3003_v1  ;;  %v829_v8 = vpop.f32.mrf.mxu0 }
 0x19e   : > { %2739 = vst [vmem:[%s3622_s4 + $0xc8] sm:$0xff] %v2523_v5   ;;  %v2518_v9 = vpack.c.bf16 %v829_v8, %v826_v2  ;;  %v1502_v10 = vpop.f32.mrf.mxu1 }
 0x19f   : > { %2770 = vst [vmem:[%s3626_s25 + $0xc8] sm:$0xff] %v2683_v7   ;;  %v2678_v11 = vpack.c.bf16 %v1502_v10, %v1499_v3  ;;  %v2927_v12 = vpop.f32.mrf.mxu0 }
 0x1a0   : > { %2738 = vst [vmem:[%s3622_s4 + $0xc0] sm:$0xff] %v2518_v9   ;;  %v3007_v13 = vpop.f32.mrf.mxu1 }
 0x1a1   : > { %2769 = vst [vmem:[%s3626_s25 + $0xc0] sm:$0xff] %v2678_v11   ;;  %v842_v14 = vpop.f32.mrf.mxu0 }
 0x1a2   : > { %v1515_v15 = vpop.f32.mrf.mxu1 }
 0x1a3   : > { %v2928_v16 = vpop.f32.mrf.mxu0 }
 0x1a4   : > { %v2533_v17 = vpack.c.bf16 %v2928_v16, %v2927_v12  ;;  %v3008_v18 = vpop.f32.mrf.mxu1 }
 0x1a5   : > { %v2693_v19 = vpack.c.bf16 %v3008_v18, %v3007_v13  ;;  %v845_v20 = vpop.f32.mrf.mxu0 }
 0x1a6   : > { %2741 = vst [vmem:[%s3622_s4 + $0xd8] sm:$0xff] %v2533_v17   ;;  %v2528_v21 = vpack.c.bf16 %v845_v20, %v842_v14  ;;  %v1518_v22 = vpop.f32.mrf.mxu1 }
 0x1a7   : > { %2772 = vst [vmem:[%s3626_s25 + $0xd8] sm:$0xff] %v2693_v19   ;;  %v2688_v23 = vpack.c.bf16 %v1518_v22, %v1515_v15  ;;  %v2931_v24 = vpop.f32.mrf.mxu0 }
 0x1a8   : > { %2740 = vst [vmem:[%s3622_s4 + $0xd0] sm:$0xff] %v2528_v21   ;;  %v3011_v25 = vpop.f32.mrf.mxu1 }
 0x1a9   : > { %2771 = vst [vmem:[%s3626_s25 + $0xd0] sm:$0xff] %v2688_v23   ;;  %v858_v26 = vpop.f32.mrf.mxu0 }
 0x1aa   : > { %v1531_v27 = vpop.f32.mrf.mxu1 }
 0x1ab   : > { %v2932_v28 = vpop.f32.mrf.mxu0 }
 0x1ac   : > { %v2543_v29 = vpack.c.bf16 %v2932_v28, %v2931_v24  ;;  %v3012_v30 = vpop.f32.mrf.mxu1 }
 0x1ad   : > { %v2703_v31 = vpack.c.bf16 %v3012_v30, %v3011_v25  ;;  %v861_v32 = vpop.f32.mrf.mxu0 }
 0x1ae   : > { %2743 = vst [vmem:[%s3622_s4 + $0xe8] sm:$0xff] %v2543_v29   ;;  %v2538_v33 = vpack.c.bf16 %v861_v32, %v858_v26  ;;  %v1534_v34 = vpop.f32.mrf.mxu1 }
 0x1af   : > { %2774 = vst [vmem:[%s3626_s25 + $0xe8] sm:$0xff] %v2703_v31   ;;  %v2698_v35 = vpack.c.bf16 %v1534_v34, %v1531_v27  ;;  %v2935_v36 = vpop.f32.mrf.mxu0 }
 0x1b0   : > { %2742 = vst [vmem:[%s3622_s4 + $0xe0] sm:$0xff] %v2538_v33   ;;  %v3015_v37 = vpop.f32.mrf.mxu1 }
 0x1b1   : > { %2773 = vst [vmem:[%s3626_s25 + $0xe0] sm:$0xff] %v2698_v35   ;;  %v874_v38 = vpop.f32.mrf.mxu0 }
 0x1b2   : > { %v1547_v39 = vpop.f32.mrf.mxu1 }
 0x1b3   : > { %v2936_v40 = vpop.f32.mrf.mxu0 }
 0x1b4   : > { %v2553_v41 = vpack.c.bf16 %v2936_v40, %v2935_v36  ;;  %v3016_v42 = vpop.f32.mrf.mxu1 }
 0x1b5   : > { %v2713_v43 = vpack.c.bf16 %v3016_v42, %v3015_v37  ;;  %v877_v44 = vpop.f32.mrf.mxu0 }
 0x1b6   : > { %2745 = vst [vmem:[%s3622_s4 + $0xf8] sm:$0xff] %v2553_v41   ;;  %v2548_v45 = vpack.c.bf16 %v877_v44, %v874_v38  ;;  %v1550_v46 = vpop.f32.mrf.mxu1 }
 0x1b7   : > { %2776 = vst [vmem:[%s3626_s25 + $0xf8] sm:$0xff] %v2713_v43   ;;  %v2708_v47 = vpack.c.bf16 %v1550_v46, %v1547_v39 }
 0x1b8   : > { %2744 = vst [vmem:[%s3622_s4 + $0xf0] sm:$0xff] %v2548_v45  }
 0x1b9   : > { %2775 = vst [vmem:[%s3626_s25 + $0xf0] sm:$0xff] %v2708_v47  }
 0x1ba   : > { %3266 = shalt.err (!%p3263_p2)
}
 0x1bb   : > { %s3267_s4 = scalar_lea.hbm %s3693_s24, 4096  ;;  %s3271_s29 = scalar_lea.hbm %s3790_s3, 16384 }
 0x1bc   : > { %p3268_p9 = scmp.ne.s32.totalorder %s3693_s24, %s3267_s4  ;;  %p3272_p13 = scmp.lt.s32.totalorder %s3693_s24, %s3790_s3 }
 0x1bd   : > { %p3273_p10 = scmp.lt.s32.totalorder %s3271_s29, %s3267_s4 }
 0x1be   : > { %p3269_p11 = pnand %p3268_p9, %p3823_p4 }
 0x1bf   : > { %p3274_p7 = por %p3273_p10, %p3272_p13 }
 0x1c0   : > { %p3270_p12 = pneg %p3269_p11 }
 0x1c2   : > { %p3275_p1 = pnand %p3274_p7, %p3270_p12 }
 0x1c4   : > { %3278 = shalt.err (!%p3275_p1)
}
 0x1c5   : > { %s3391_s14 = smov 64   ;;  %s3392_s23 = smov 4  }
 0x1c6   : > { %3027 = dma.vmem_to_hbm [thread:$0]  (%p3823_p4), %s3696_s19, 4096, %s3693_s24, %s1883_s15, %s3391_s14, %s3391_s14, %s3392_s23  }
 0x1c7   : > { %s1888_s10 = scalar_lea.sflag [#allocation10], %s3572_s30  ;;  %s3279_s1 = scalar_lea.vmem %s3705_s26, 4096 }
 0x1c8   : > { %p3280_p6 = scmp.ne.s32.totalorder %s3705_s26, %s3279_s1  ;;  %s3393_s28 = smov [#allocation9]  }
 0x1c9   : > { %s3283_s9 = sshll.u32 %s3393_s28, 4  ;;  %s3284_s9 = int_to_ptr.vmem [resolvable:$false] %s3283_s9 }
 0x1ca   : > { %p3281_p8 = pnand %p3280_p6, %p3823_p4  ;;  %s3285_s12 = scalar_lea.vmem %s3284_s9, 8192 }
 0x1cb   : > { %p3286_p0 = scmp.lt.s32.totalorder %s3705_s26, %s3284_s9  ;;  %p3287_p5 = scmp.lt.s32.totalorder %s3285_s12, %s3279_s1 }
 0x1cc   : > { %p3282_p3 = pneg %p3281_p8 }
 0x1cd   : > { %p3288_p2 = por %p3287_p5, %p3286_p0 }
 0x1cf   : > { %p3289_p9 = pnand %p3288_p2, %p3282_p3 }
 0x1d1   : > { %3292 = shalt.err (!%p3289_p9)
}
 0x1d2   : > { %s3293_s19 = scalar_lea.hbm %s3703_s6, 4096  ;;  %s3297_s15 = scalar_lea.hbm %s3822_s11, 16384 }
 0x1d3   : > { %p3294_p11 = scmp.ne.s32.totalorder %s3703_s6, %s3293_s19  ;;  %p3298_p10 = scmp.lt.s32.totalorder %s3703_s6, %s3822_s11 }
 0x1d4   : > { %p3299_p7 = scmp.lt.s32.totalorder %s3297_s15, %s3293_s19 }
 0x1d5   : > { %p3295_p12 = pnand %p3294_p11, %p3823_p4 }
 0x1d6   : > { %p3300_p1 = por %p3299_p7, %p3298_p10 }
 0x1d7   : > { %p3296_p13 = pneg %p3295_p12 }
 0x1d9   : > { %p3301_p6 = pnand %p3300_p1, %p3296_p13 }
 0x1db   : > { %3304 = shalt.err (!%p3301_p6)
}
 0x1dc   : > { %3028 = dma.vmem_to_hbm [thread:$0]  (%p3823_p4), %s3705_s26, 4096, %s3703_s6, %s1888_s10, %s3391_s14, %s3391_s14, %s3392_s23  }
 0x1dd PF: > { %s3824_s25 = sld [smem:[#allocation15_spill]]  ;;  %p3054_p8 = scmp.ge.s32.totalorder %s3383_s22, 2 }
 0x1de   : > { %s3825_s27 = sld [smem:[#allocation16_spill]] }
 0x1e3   : > { %s1936_s29 = sand.u32 1, %s3824_s25  }
 0x1e4   : > { %p3826_p3 = scmp.ne.s32.totalorder %s3825_s27, 0  ;;  %s1937_s8 = scalar_lea.sflag [#allocation4], %s1936_s29 }
 0x1e6   : > { %p3043_p0 = pnand %p3054_p8, %p3826_p3 }
 0x1e8   : > { %p3044_p5 = pneg %p3043_p0 }
 0x1ea   : > { %3346 = dma.done.wait (%p3044_p5), %s1937_s8, 4096  }
 0x1eb   : > { %3348 = vsyncadd (%p3044_p5), %s1937_s8, 4294963200  ;;  %s1946_s18 = scalar_lea.sflag [#allocation10], %s1936_s29 }
 0x1ec   : > { %3350 = dma.done.wait (%p3044_p5), %s1946_s18, 4096  }
 0x1ed   : > { %3352 = vsyncadd (%p3044_p5), %s1946_s18, 4294963200  ;;  %s25_s22 = sadd.s32 1, %s3383_s22   ;;  %s3827_s26 = sld [smem:[#allocation17_spill]] }
 0x1ee   : > { %p22_p2 = scmp.ge.s32.totalorder %s25_s22, 6   ;;  %s3828_s15 = smov %s3359_s16 }
 0x1ef   : > { %s3829_s16 = smov %s3363_s17  ;;  %s3830_s17 = smov %s3549_s2 }
 0x1f0   : > { %s3831_s18 = smov %s3375_s20  ;;  %s3832_s19 = smov %s3379_s21 }
 0x1f1   : > { %s3834_s21 = smov %s3840_s5  ;;  %24 = sbr.rel (!%p22_p2) target bundleno = 14 (0xe), region = 102 }
 0x1f3   : > { %s3833_s20 = smov %s3827_s26 }
 0x1f6   :  { %1951 = vsyncpa [#allocation3], 1 }
 0x1f7   :  { %1953 = vsyncpa [#allocation3 + $0x1], 1 }
 0x1f8   :  { %1954 = vsyncpa [#allocation6], 1 }
 0x1f9   :  { %1955 = vsyncpa [#allocation4], 1 }
 0x1fa   :  { %1957 = vsyncpa [#allocation4 + $0x1], 1 }
 0x1fb   :  { %1958 = vsyncpa [#allocation10], 1 }
 0x1fc   :  { %1960 = vsyncpa [#allocation10 + $0x1], 1 }

</bundles_post_ra>
